<compile_context>
chip_gen: v7x
topology: tpu7x:2x2x1
jax: 0.10.0
libtpu: 0.0.40
codegen_flags: <defaults>
</compile_context>

<pallas_src>
import functools

import jax
import jax.numpy as jnp
from jax.experimental import pallas as pl
from jax.experimental.pallas import tpu as pltpu


# --------------------------------------------------------------------------- kernel

def _hkd_kernel(qs_ref, ps_ref, ns_ref, qt_ref, pt_ref, nt_ref, out_ref, *,
                temperature):
    """One batch tile: vectorized logits + softmax/log-softmax + partial KL sum."""
    inv_t = jnp.float32(1.0 / temperature)

    def tile_logits(q_ref, p_ref, n_ref):
        # Explicit f32 upcast of the operands (no-op for f32 inputs, exact for bf16).
        q = q_ref[...].astype(jnp.float32)          # (tb, d)
        p = p_ref[...].astype(jnp.float32)          # (tb, d)
        n = n_ref[...].astype(jnp.float32)          # (tb, K, d)
        pos_col = jnp.sum(q * p, axis=-1, keepdims=True)          # (tb, 1)
        neg_logits = jnp.sum(q[:, None, :] * n, axis=-1)          # (tb, K)  one reduce
        return jnp.concatenate([pos_col, neg_logits], axis=-1) * inv_t   # (tb, 1+K)

    prob_s = tile_logits(qs_ref, ps_ref, ns_ref)
    prob_t = tile_logits(qt_ref, pt_ref, nt_ref)

    # Student: log-softmax over the (1+K) logits.
    z_s = prob_s - jnp.max(prob_s, axis=-1, keepdims=True)
    log_sum_s = jnp.log(jnp.sum(jnp.exp(z_s), axis=-1, keepdims=True))
    log_p_s = z_s - log_sum_s

    # Teacher: softmax (and its log) over the (1+K) logits — exact division.
    z_t = prob_t - jnp.max(prob_t, axis=-1, keepdims=True)
    e_t = jnp.exp(z_t)
    s_t = jnp.sum(e_t, axis=-1, keepdims=True)
    p_t = e_t / s_t
    log_p_t = z_t - jnp.log(s_t)

    # Partial of sum_rows sum_j p_t * (log p_t - log p_s); T^2/bs applied in wrapper.
    partial = jnp.sum(p_t * (log_p_t - log_p_s))
    # Lane-dense (1, 8, 128) per-block output -> unmasked store; wrapper reads [i,0,0].
    out_ref[...] = jnp.broadcast_to(partial, out_ref.shape)


# ------------------------------------------------------------------- sizing helpers

def _round_up(x, m):
    return ((x + m - 1) // m) * m


def _sublane_packing(dtype):
    """Rows per vreg along sublanes: 8 for 32-bit, 16 for bf16, 32 for int8/fp8."""
    itemsize = jnp.dtype(dtype).itemsize
    return max(1, 4 // max(1, itemsize)) * 8


def _vmem_capacity_bytes():
    """Physical VMEM of the local chip; conservative default if query unavailable."""
    try:
        info = pltpu.get_tpu_info()
        cap = getattr(info, "vmem_capacity_bytes", None)
        if cap:
            return int(cap)
    except Exception:
        pass
    return 64 * 1024 * 1024   # assume v7x-class (smallest VMEM) if unknown


def _padded_row_bytes(k, dim, itemsize):
    """VMEM bytes per batch row for (query + pos + K negatives) of one tower,
    including lane padding (dim -> x128) and the sublane padding of the 3-D
    negative block (K -> x8)."""
    d_pad = _round_up(dim, 128)
    k_pad = _round_up(k, 8)
    return (2 + k_pad) * d_pad * itemsize


def _pick_batch_tile(bs, bytes_per_batch_row, vmem_budget_bytes, *, step, max_tile=None):
    """Largest multiple-of-`step` divisor of bs (optionally capped at max_tile) whose
    double-buffered block fits the VMEM budget."""
    cands = [tb for tb in range(step, bs + 1, step) if bs % tb == 0]
    if max_tile is not None:
        capped = [tb for tb in cands if tb <= max_tile]
        if capped:
            cands = capped
    if not cands:
        return bs   # bs too small / not a multiple of step: single full block
    fitting = [tb for tb in cands if 2 * tb * bytes_per_batch_row <= vmem_budget_bytes]
    if fitting:
        return max(fitting)
    return min(cands)


# ------------------------------------------------------------------------- wrapper

def hkd_loss(outputs, teacher_outputs, *, bs, temperature):
    n, dim_s = outputs.shape
    n_t, dim_t = teacher_outputs.shape
    assert n == n_t
    n_neg = n - 2 * bs
    assert n_neg % bs == 0, "neg rows must reshape to (bs, -1, dim)"
    k = n_neg // bs
    assert k >= 1

    # Row splits only (no concat of the big negative tensor); the 3-D view of the
    # negatives is a free row-major reshape.
    query_s, pos_s = outputs[:bs], outputs[bs:2 * bs]
    neg_s = outputs[2 * bs:].reshape(bs, k, dim_s)
    query_t, pos_t = teacher_outputs[:bs], teacher_outputs[bs:2 * bs]
    neg_t = teacher_outputs[2 * bs:].reshape(bs, k, dim_t)

    # Generation-aware VMEM sizing.
    vmem_cap = _vmem_capacity_bytes()
    if vmem_cap >= 128 * 1024 * 1024:           # v5e / v6e: 128 MiB VMEM, 1 TC
        vmem_budget = 64 * 1024 * 1024
        vmem_limit = 96 * 1024 * 1024
        want_two_blocks = False
    else:                                        # v7x-class: 64 MiB VMEM, 2 TCs
        vmem_budget = 20 * 1024 * 1024
        vmem_limit = 32 * 1024 * 1024
        want_two_blocks = True

    bytes_per_row = (_padded_row_bytes(k, dim_s, outputs.dtype.itemsize)
                     + _padded_row_bytes(k, dim_t, teacher_outputs.dtype.itemsize))
    step = max(_sublane_packing(outputs.dtype), _sublane_packing(teacher_outputs.dtype))
    max_tile = bs // 2 if (want_two_blocks and bs >= 2 * step) else None

    tb = _pick_batch_tile(bs, bytes_per_row, vmem_budget, step=step, max_tile=max_tile)
    num_blocks = bs // tb

    kernel = functools.partial(_hkd_kernel, temperature=float(temperature))

    partials = pl.pallas_call(
        kernel,
        out_shape=jax.ShapeDtypeStruct((num_blocks, 8, 128), jnp.float32),
        grid=(num_blocks,),
        in_specs=[
            pl.BlockSpec((tb, dim_s), lambda i: (i, 0)),
            pl.BlockSpec((tb, dim_s), lambda i: (i, 0)),
            pl.BlockSpec((tb, k, dim_s), lambda i: (i, 0, 0)),
            pl.BlockSpec((tb, dim_t), lambda i: (i, 0)),
            pl.BlockSpec((tb, dim_t), lambda i: (i, 0)),
            pl.BlockSpec((tb, k, dim_t), lambda i: (i, 0, 0)),
        ],
        out_specs=pl.BlockSpec((1, 8, 128), lambda i: (i, 0, 0)),
        compiler_params=pltpu.CompilerParams(
            dimension_semantics=("parallel",),   # batch tiles shard across 2 TCs on v7x
            vmem_limit_bytes=vmem_limit),
    )(query_s, pos_s, neg_s, query_t, pos_t, neg_t)

    # Tiny epilogue in plain JAX: sum per-block partials, apply T^2 / bs (batchmean).
    kl_sum = jnp.sum(partials[:, 0, 0])
    return kl_sum * (temperature * temperature / bs)


# ----------------------------------------------------------------------- reference

def hkd_loss_ref(outputs, teacher_outputs, *, bs, temperature):
    """Pure-JAX reference mirroring the PyTorch forward (for verification)."""
    n, dim_s = outputs.shape
    _, dim_t = teacher_outputs.shape
    k = (n - 2 * bs) // bs
    q_s, p_s, n_s = outputs[:bs], outputs[bs:2 * bs], outputs[2 * bs:]
    q_t, p_t_, n_t = teacher_outputs[:bs], teacher_outputs[bs:2 * bs], teacher_outputs[2 * bs:]
    pn_s = jnp.concatenate([p_s.reshape(bs, 1, dim_s), n_s.reshape(bs, k, dim_s)], axis=1)
    pn_t = jnp.concatenate([p_t_.reshape(bs, 1, dim_t), n_t.reshape(bs, k, dim_t)], axis=1)
    prob_s = jnp.einsum('bd,bkd->bk', q_s, pn_s) / temperature
    prob_t = jnp.einsum('bd,bkd->bk', q_t, pn_t) / temperature
    log_p_s = jax.nn.log_softmax(prob_s, axis=1)
    p_t = jax.nn.softmax(prob_t, axis=1)
    kl = jnp.sum(p_t * (jnp.log(p_t) - log_p_s)) / bs
    return kl * (temperature * temperature)


if __name__ == "__main__":
    # opt.bs = 4, temperature = 2.0; K = 6 negatives per query -> N = bs*(2+K) = 32
    bs = 4
    temperature = 2.0
    k = 6
    n = bs * (2 + k)
    dim_s, dim_t = 32, 64   # student / teacher embedding widths may differ

    key = jax.random.PRNGKey(0)
    k1, k2 = jax.random.split(key)
    outputs = jax.random.normal(k1, (n, dim_s), dtype=jnp.float32)
    teacher_outputs = jax.random.normal(k2, (n, dim_t), dtype=jnp.float32)

    loss = hkd_loss(outputs, teacher_outputs, bs=bs, temperature=temperature)
    loss = jax.block_until_ready(loss)

    ref = hkd_loss_ref(outputs, teacher_outputs, bs=bs, temperature=temperature)
    assert jnp.allclose(loss, ref, rtol=2e-3, atol=1e-5), (loss, ref)

    print("KERNEL_OK")
</pallas_src>

<mosaic_0001>
module attributes {stable_mosaic.version = 11 : i64} {
  func.func @_hkd_kernel(%arg0: i32, %arg1: memref<4x32xf32, #tpu.memory_space<vmem>>, %arg2: memref<4x32xf32, #tpu.memory_space<vmem>>, %arg3: memref<4x6x32xf32, #tpu.memory_space<vmem>>, %arg4: memref<4x64xf32, #tpu.memory_space<vmem>>, %arg5: memref<4x64xf32, #tpu.memory_space<vmem>>, %arg6: memref<4x6x64xf32, #tpu.memory_space<vmem>>, %arg7: memref<1x8x128xf32, #tpu.memory_space<vmem>>) attributes {dimension_semantics = [#tpu.dimension_semantics<parallel>], iteration_bounds = array<i64: 1>, scalar_prefetch = 0 : i64, scratch_operands = 0 : i64, tpu.core_type = #tpu.core_type<tc>, window_params = [{transform_indices = @transform_0, window_bounds = array<i64: 4, 32>}, {transform_indices = @transform_1, window_bounds = array<i64: 4, 32>}, {transform_indices = @transform_2, window_bounds = array<i64: 4, 6, 32>}, {transform_indices = @transform_3, window_bounds = array<i64: 4, 64>}, {transform_indices = @transform_4, window_bounds = array<i64: 4, 64>}, {transform_indices = @transform_5, window_bounds = array<i64: 4, 6, 64>}, {transform_indices = @transform_6, window_bounds = array<i64: 1, 8, 128>}]} {
    %c0 = arith.constant 0 : index
    %c0_0 = arith.constant 0 : index
    %0 = vector.load %arg1[%c0, %c0_0] : memref<4x32xf32, #tpu.memory_space<vmem>>, vector<4x32xf32>
    %c0_1 = arith.constant 0 : index
    %c0_2 = arith.constant 0 : index
    %1 = vector.load %arg2[%c0_1, %c0_2] : memref<4x32xf32, #tpu.memory_space<vmem>>, vector<4x32xf32>
    %c0_3 = arith.constant 0 : index
    %c0_4 = arith.constant 0 : index
    %c0_5 = arith.constant 0 : index
    %2 = vector.load %arg3[%c0_3, %c0_4, %c0_5] : memref<4x6x32xf32, #tpu.memory_space<vmem>>, vector<4x6x32xf32>
    %3 = arith.mulf %0, %1 : vector<4x32xf32>
    %cst = arith.constant dense<0.000000e+00> : vector<4xf32>
    %4 = vector.multi_reduction <add>, %3, %cst [1] : vector<4x32xf32> to vector<4xf32>
    %5 = vector.shape_cast %4 : vector<4xf32> to vector<4x1xf32>
    %6 = vector.shape_cast %0 : vector<4x32xf32> to vector<4x1x32xf32>
    %7 = vector.broadcast %6 : vector<4x1x32xf32> to vector<4x6x32xf32>
    %8 = arith.mulf %7, %2 : vector<4x6x32xf32>
    %cst_6 = arith.constant dense<0.000000e+00> : vector<4x6xf32>
    %9 = vector.multi_reduction <add>, %8, %cst_6 [2] : vector<4x6x32xf32> to vector<4x6xf32>
    %10 = tpu.concatenate %5, %9 in 1 : vector<4x1xf32>, vector<4x6xf32> -> vector<4x7xf32>
    %cst_7 = arith.constant 5.000000e-01 : f32
    %11 = vector.broadcast %cst_7 : f32 to vector<4x7xf32>
    %12 = arith.mulf %10, %11 : vector<4x7xf32>
    %c0_8 = arith.constant 0 : index
    %c0_9 = arith.constant 0 : index
    %13 = vector.load %arg4[%c0_8, %c0_9] : memref<4x64xf32, #tpu.memory_space<vmem>>, vector<4x64xf32>
    %c0_10 = arith.constant 0 : index
    %c0_11 = arith.constant 0 : index
    %14 = vector.load %arg5[%c0_10, %c0_11] : memref<4x64xf32, #tpu.memory_space<vmem>>, vector<4x64xf32>
    %c0_12 = arith.constant 0 : index
    %c0_13 = arith.constant 0 : index
    %c0_14 = arith.constant 0 : index
    %15 = vector.load %arg6[%c0_12, %c0_13, %c0_14] : memref<4x6x64xf32, #tpu.memory_space<vmem>>, vector<4x6x64xf32>
    %16 = arith.mulf %13, %14 : vector<4x64xf32>
    %cst_15 = arith.constant dense<0.000000e+00> : vector<4xf32>
    %17 = vector.multi_reduction <add>, %16, %cst_15 [1] : vector<4x64xf32> to vector<4xf32>
    %18 = vector.shape_cast %17 : vector<4xf32> to vector<4x1xf32>
    %19 = vector.shape_cast %13 : vector<4x64xf32> to vector<4x1x64xf32>
    %20 = vector.broadcast %19 : vector<4x1x64xf32> to vector<4x6x64xf32>
    %21 = arith.mulf %20, %15 : vector<4x6x64xf32>
    %cst_16 = arith.constant dense<0.000000e+00> : vector<4x6xf32>
    %22 = vector.multi_reduction <add>, %21, %cst_16 [2] : vector<4x6x64xf32> to vector<4x6xf32>
    %23 = tpu.concatenate %18, %22 in 1 : vector<4x1xf32>, vector<4x6xf32> -> vector<4x7xf32>
    %cst_17 = arith.constant 5.000000e-01 : f32
    %24 = vector.broadcast %cst_17 : f32 to vector<4x7xf32>
    %25 = arith.mulf %23, %24 : vector<4x7xf32>
    %cst_18 = arith.constant dense<0xFF800000> : vector<4xf32>
    %26 = vector.multi_reduction <maximumf>, %12, %cst_18 [1] : vector<4x7xf32> to vector<4xf32>
    %27 = vector.shape_cast %26 : vector<4xf32> to vector<4x1xf32>
    %28 = vector.broadcast %27 : vector<4x1xf32> to vector<4x7xf32>
    %29 = arith.subf %12, %28 : vector<4x7xf32>
    %30 = math.exp %29 : vector<4x7xf32>
    %cst_19 = arith.constant dense<0.000000e+00> : vector<4xf32>
    %31 = vector.multi_reduction <add>, %30, %cst_19 [1] : vector<4x7xf32> to vector<4xf32>
    %32 = vector.shape_cast %31 : vector<4xf32> to vector<4x1xf32>
    %33 = math.log %32 : vector<4x1xf32>
    %34 = vector.broadcast %33 : vector<4x1xf32> to vector<4x7xf32>
    %35 = arith.subf %29, %34 : vector<4x7xf32>
    %cst_20 = arith.constant dense<0xFF800000> : vector<4xf32>
    %36 = vector.multi_reduction <maximumf>, %25, %cst_20 [1] : vector<4x7xf32> to vector<4xf32>
    %37 = vector.shape_cast %36 : vector<4xf32> to vector<4x1xf32>
    %38 = vector.broadcast %37 : vector<4x1xf32> to vector<4x7xf32>
    %39 = arith.subf %25, %38 : vector<4x7xf32>
    %40 = math.exp %39 : vector<4x7xf32>
    %cst_21 = arith.constant dense<0.000000e+00> : vector<4xf32>
    %41 = vector.multi_reduction <add>, %40, %cst_21 [1] : vector<4x7xf32> to vector<4xf32>
    %42 = vector.shape_cast %41 : vector<4xf32> to vector<4x1xf32>
    %43 = vector.broadcast %42 : vector<4x1xf32> to vector<4x7xf32>
    %44 = arith.divf %40, %43 : vector<4x7xf32>
    %45 = math.log %42 : vector<4x1xf32>
    %46 = vector.broadcast %45 : vector<4x1xf32> to vector<4x7xf32>
    %47 = arith.subf %39, %46 : vector<4x7xf32>
    %48 = arith.subf %47, %35 : vector<4x7xf32>
    %49 = arith.mulf %44, %48 : vector<4x7xf32>
    %50 = vector.shape_cast %49 : vector<4x7xf32> to vector<1x4x7xf32>
    %cst_22 = arith.constant dense<0.000000e+00> : vector<1xf32>
    %51 = vector.multi_reduction <add>, %50, %cst_22 [1, 2] : vector<1x4x7xf32> to vector<1xf32>
    %52 = vector.shape_cast %51 : vector<1xf32> to vector<1x1x1xf32>
    %53 = vector.extract %52[0, 0, 0] : f32 from vector<1x1x1xf32>
    %54 = vector.broadcast %53 : f32 to vector<1x8x128xf32>
    %c0_23 = arith.constant 0 : index
    %c0_24 = arith.constant 0 : index
    %c0_25 = arith.constant 0 : index
    %55 = vector.load %arg7[%c0_23, %c0_24, %c0_25] : memref<1x8x128xf32, #tpu.memory_space<vmem>>, vector<1x8x128xf32>
    tpu.vector_store %arg7[%c0_23, %c0_24, %c0_25], %54 {strides = array<i32>} : memref<1x8x128xf32, #tpu.memory_space<vmem>>, vector<1x8x128xf32>,
    return
  }
  func.func @transform_0(%arg0: i32) -> (i32, i32) {
    %c0_i32 = arith.constant 0 : i32
    %c0_i32_0 = arith.constant 0 : i32
    return %arg0, %c0_i32 : i32, i32
  }
  func.func @transform_1(%arg0: i32) -> (i32, i32) {
    %c0_i32 = arith.constant 0 : i32
    %c0_i32_0 = arith.constant 0 : i32
    return %arg0, %c0_i32 : i32, i32
  }
  func.func @transform_2(%arg0: i32) -> (i32, i32, i32) {
    %c0_i32 = arith.constant 0 : i32
    %c0_i32_0 = arith.constant 0 : i32
    %c0_i32_1 = arith.constant 0 : i32
    return %arg0, %c0_i32, %c0_i32_0 : i32, i32, i32
  }
  func.func @transform_3(%arg0: i32) -> (i32, i32) {
    %c0_i32 = arith.constant 0 : i32
    %c0_i32_0 = arith.constant 0 : i32
    return %arg0, %c0_i32 : i32, i32
  }
  func.func @transform_4(%arg0: i32) -> (i32, i32) {
    %c0_i32 = arith.constant 0 : i32
    %c0_i32_0 = arith.constant 0 : i32
    return %arg0, %c0_i32 : i32, i32
  }
  func.func @transform_5(%arg0: i32) -> (i32, i32, i32) {
    %c0_i32 = arith.constant 0 : i32
    %c0_i32_0 = arith.constant 0 : i32
    %c0_i32_1 = arith.constant 0 : i32
    return %arg0, %c0_i32, %c0_i32_0 : i32, i32, i32
  }
  func.func @transform_6(%arg0: i32) -> (i32, i32, i32) {
    %c0_i32 = arith.constant 0 : i32
    %c0_i32_0 = arith.constant 0 : i32
    %c0_i32_1 = arith.constant 0 : i32
    return %arg0, %c0_i32, %c0_i32_0 : i32, i32, i32
  }
}

</mosaic_0001>

<bundles_post_ra>
// kernel: tpu_custom_call.1
= control target key start
LH: loop header
LB: loop body
LE: loop exit
PB: predicated region body
PF: predicated region fallthrough
CT: control target
= control target key end

     0   :  { %v39_v0 = vlaneseq  ;;  %v322_v1 = vmov 1966171168   ;;  %s430_s0 = inlined_call_operand.vmem [shape: f32[4,32], index: 0, kind: input, shape index: {}]   ;;  %s431_s1 = inlined_call_operand.vmem [shape: f32[4,32], index: 1, kind: input, shape index: {}]   ;;  %s432_s2 = inlined_call_operand.vmem [shape: f32[4,6,32], index: 2, kind: input, shape index: {}]   ;;  %s433_s3 = inlined_call_operand.vmem [shape: f32[4,64], index: 3, kind: input, shape index: {}]   ;;  %s434_s4 = inlined_call_operand.vmem [shape: f32[4,64], index: 4, kind: input, shape index: {}]   ;;  %s435_s5 = inlined_call_operand.vmem [shape: f32[4,6,64], index: 5, kind: input, shape index: {}]   ;;  %s436_s6 = inlined_call_operand.hbm [shape: f32[1,8,128], index: 6, kind: output, shape index: {}]  }
   0x1   :  { %v37_v2 = vunpack.c.l.s4 %v322_v1  ;;  %v130_v7 = vld [vmem:[%s433_s3] sm:$0xf] }
   0x2   :  { %v40_v3 = vshrl.u32 %v39_v0, 7  ;;  %v102_v4 = vand.u32 127, %v39_v0  ;;  %v24_v8 = vld [vmem:[%s430_s0] sm:$0xf] }
   0x3   :  { %v38_v5 = vunpack.c.0.s8 %v37_v2 }
   0x4   :  { %v103_v6 = vadd.s32 4294967295, %v102_v4 }
   0x5   :  { %v41_v9 = vsub.s32 %v38_v5, %v40_v3 }
   0x6   :  { %11 = vsyncpa [#allocation3], 0  ;;  %v365_v10 = vsub.s32 %v103_v6, %v40_v3  ;;  %v62_v11 = vsub.s32 0, %v40_v3  ;;  %v132_v18 = vld [vmem:[%s435_s5] sm:$0x3f]  ;;  %vm190_vm0 = vcmask 521216  }
   0x7   :  { %v148_v12 = vrot.slane %v130_v7, %v41_v9  ;;  %v42_v13 = vrot.slane %v24_v8, %v41_v9  ;;  %v26_v19 = vld [vmem:[%s432_s2] sm:$0x3f]  ;;  %vm84_vm1 = vcmask 259072   ;;  %v133_v24 = vld [vmem:[%s435_s5 + $0x8] sm:$0x3f]  ;;  %vm137_vm2 = vcmask 519168  }
   0x8   :  { %v27_v25 = vld [vmem:[%s432_s2 + $0x8] sm:$0x3f]  ;;  %v134_v32 = vld [vmem:[%s435_s5 + $0x10] sm:$0x3f]  ;;  %v135_v48 = vld [vmem:[%s435_s5 + $0x18] sm:$0x3f] }
   0x9   :  { %v156_v14 = vrot.slane %v148_v12, %v41_v9  ;;  %v50_v15 = vrot.slane %v42_v13, %v41_v9  ;;  %v149_v16 = vcombine.high %v148_v12, %v148_v12  ;;  %v43_v17 = vcombine.high %v42_v13, %v42_v13  ;;  %v28_v33 = vld [vmem:[%s432_s2 + $0x10] sm:$0x3f]  ;;  %v29_v49 = vld [vmem:[%s432_s2 + $0x18] sm:$0x3f]  ;;  %v131_v54 = vld [vmem:[%s434_s4] sm:$0xf] }
   0xa   :  { %v25_v55 = vld [vmem:[%s431_s1] sm:$0xf]  ;;  %v136_v58 = vmul.f32 %v131_v54, %v130_v7  ;;  %vm31_vm3 = vcmask 257024   ;;  %vm120_vm4 = vcmask 1041409   ;;  %vm122_vm5 = vcmask 1042434   ;;  %s323_s1 = smov [#allocation2]  }
   0xb   :  { %v169_v20 = vrot.slane %v156_v14, %v62_v11  ;;  %v63_v21 = vrot.slane %v50_v15, %v62_v11  ;;  %v163_v22 = vrot.slane %v149_v16, %v41_v9  ;;  %v57_v23 = vrot.slane %v43_v17, %v41_v9  ;;  %s276_s2 = sshll.u32 %s323_s1, 4  ;;  %s277_s2 = int_to_ptr.vmem [resolvable:$true] %s276_s2 }
   0xc   :  { %v164_v26 = vcombine.high %v156_v14, %v156_v14  ;;  %v58_v27 = vcombine.high %v50_v15, %v50_v15  ;;  %v30_v59 = vmul.f32 %v25_v55, %v24_v8  ;;  %v138_v60 = vsel %vm137_vm2, %v136_v58, 0.0  ;;  %s298_s5 = scalar_lea.vmem %s277_s2, 128  ;;  %p303_p1 = scmp.lt.s32.totalorder %s277_s2, %s277_s2 }
   0xd   :  { %v186_v28 = vmul.f32 %v169_v20, %v132_v18  ;;  %v80_v29 = vmul.f32 %v63_v21, %v26_v19  ;;  %v173_v30 = vrot.slane %v163_v22, %v62_v11  ;;  %v67_v31 = vrot.slane %v57_v23, %v62_v11  ;;  %p299_p0 = scmp.ne.s32.totalorder %s277_s2, %s298_s5  ;;  %p304_p2 = scmp.lt.s32.totalorder %s298_s5, %s298_s5 }
   0xe   :  { %v177_v34 = vrot.slane %v164_v26, %v62_v11  ;;  %v71_v35 = vrot.slane %v58_v27, %v62_v11  ;;  %v165_v36 = vcombine.high %v163_v22, %v163_v22  ;;  %v59_v37 = vcombine.high %v57_v23, %v57_v23 }
   0xf   :  { %v191_v38 = vsel %vm190_vm0, %v186_v28, 0.0  ;;  %v85_v39 = vsel %vm84_vm1, %v80_v29, 0.0  ;;  %v187_v40 = vmul.f32 %v173_v30, %v133_v24  ;;  %v81_v41 = vmul.f32 %v67_v31, %v27_v25  ;;  %p305_p3 = por %p304_p2, %p303_p1 }
  0x10   :  { %192 = vadd.xlane.f32.xlu1 %v191_v38  ;;  %86 = vadd.xlane.f32.xlu0 %v85_v39  ;;  %v188_v42 = vmul.f32 %v177_v34, %v134_v32  ;;  %v82_v43 = vmul.f32 %v71_v35, %v28_v33  ;;  %v181_v46 = vrot.slane %v165_v36, %v62_v11  ;;  %v32_v61 = vsel %vm31_vm3, %v30_v59, 0.0 }
  0x11   :  { %v194_v44 = vsel %vm190_vm0, %v187_v40, 0.0  ;;  %v88_v45 = vsel %vm84_vm1, %v81_v41, 0.0  ;;  %v75_v47 = vrot.slane %v59_v37, %v62_v11  ;;  %vm124_vm6 = vcmask 1043459   ;;  %p306_p4 = pnand %p305_p3, %p299_p0 }
  0x12   :  { %v197_v50 = vsel %vm190_vm0, %v188_v42, 0.0  ;;  %v91_v51 = vsel %vm84_vm1, %v82_v43, 0.0  ;;  %v189_v52 = vmul.f32 %v181_v46, %v135_v48  ;;  %vm127_vm7 = vcmask 7168  }
  0x13   :  { %v83_v53 = vmul.f32 %v75_v47, %v29_v49  ;;  %vm229_vm8 = vcmask 52224  }
  0x14   :  { %195 = vadd.xlane.f32.xlu1 %v194_v44  ;;  %89 = vadd.xlane.f32.xlu0 %v88_v45  ;;  %v200_v56 = vsel %vm190_vm0, %v189_v52, 0.0 }
  0x15   :  { %v94_v57 = vsel %vm84_vm1, %v83_v53, 0.0 }
  0x18   :  { %198 = vadd.xlane.f32.xlu1 %v197_v50  ;;  %92 = vadd.xlane.f32.xlu0 %v91_v51 }
  0x1c   :  { %201 = vadd.xlane.f32.xlu1 %v200_v56  ;;  %95 = vadd.xlane.f32.xlu0 %v94_v57 }
  0x20   :  { %139 = vadd.xlane.f32.xlu1 %v138_v60  ;;  %33 = vadd.xlane.f32.xlu0 %v32_v61 }
  0x9d   :  { %v193_v62 = vpop.xlane.xlu1 %192  ;;  %v87_v63 = vpop.xlane.xlu0 %86 }
  0x9e   :  { %v210_v8 = vrot.slane %v193_v62, %v365_v10  ;;  %v107_v9 = vrot.slane %v87_v63, %v365_v10 }
  0xa1   :  { %v196_v0 = vpop.xlane.xlu1 %195  ;;  %v90_v1 = vpop.xlane.xlu0 %89 }
  0xa2   :  { %v214_v4 = vrot.slane %v196_v0, %v365_v10  ;;  %v111_v5 = vrot.slane %v90_v1, %v365_v10 }
  0xa4   :  { %v223_v13 = vsel %vm120_vm4, %v214_v4, %v210_v8  ;;  %v121_v14 = vsel %vm120_vm4, %v111_v5, %v107_v9 }
  0xa5   :  { %v199_v2 = vpop.xlane.xlu1 %198  ;;  %v93_v3 = vpop.xlane.xlu0 %92 }
  0xa6   :  { %v218_v6 = vrot.slane %v199_v2, %v365_v10  ;;  %v115_v7 = vrot.slane %v93_v3, %v365_v10 }
  0xa8   :  { %v224_v17 = vsel %vm122_vm5, %v218_v6, %v223_v13  ;;  %v123_v18 = vsel %vm122_vm5, %v115_v7, %v121_v14 }
  0xa9   :  { %v202_v11 = vpop.xlane.xlu1 %201  ;;  %v96_v12 = vpop.xlane.xlu0 %95 }
  0xaa   :  { %v222_v15 = vrot.slane %v202_v11, %v365_v10  ;;  %v119_v16 = vrot.slane %v96_v12, %v365_v10 }
  0xac   :  { %v225_v19 = vsel %vm124_vm6, %v222_v15, %v224_v17  ;;  %v125_v20 = vsel %vm124_vm6, %v119_v16, %v123_v18 }
  0xad   :  { %v140_v21 = vpop.xlane.xlu1 %139  ;;  %v34_v22 = vpop.xlane.xlu0 %33 }
  0xae   :  { %v227_v23 = vsel %vm127_vm7, %v140_v21, %v225_v19  ;;  %v128_v24 = vsel %vm127_vm7, %v34_v22, %v125_v20 }
  0xaf   :  { %v228_v25 = vmul.f32 0.5, %v227_v23  ;;  %v129_v26 = vmul.f32 0.5, %v128_v24 }
  0xb1   :  { %v242_v27 = vsel %vm229_vm8, %v228_v25, -inf  ;;  %v230_v28 = vsel %vm229_vm8, %v129_v26, -inf }
  0xb2   :  { %243 = vmax.xlane.f32.xlu1 %v242_v27  ;;  %231 = vmax.xlane.f32.xlu0 %v230_v28 }
 0x13f   :  { %v244_v29 = vpop.xlane.xlu1 %243  ;;  %v232_v10 = vpop.xlane.xlu0 %231 }
 0x140   :  { %v245_v30 = vsub.f32 %v228_v25, %v244_v29  ;;  %v233_v31 = vsub.f32 %v129_v26, %v232_v10 }
 0x142   :  { %v246_v32 = vmul.f32 1.442695, %v245_v30  ;;  %v234_v33 = vmul.f32 1.442695, %v233_v31 }
 0x144   :  { %288 = vpow2.f32 %v246_v32 }
 0x145   :  { %290 = vpow2.f32 %v234_v33 }
 0x14e   :  { %v289_v34 = vpop.eup %288 }
 0x14f   :  { %v291_v35 = vpop.eup %290  ;;  %v248_v36 = vsel %vm229_vm8, %v289_v34, 0.0 }
 0x150   :  { %249 = vadd.xlane.f32.xlu1 %v248_v36  ;;  %v236_v37 = vsel %vm229_vm8, %v291_v35, 0.0 }
 0x151   :  { %237 = vadd.xlane.f32.xlu0 %v236_v37 }
 0x1dd   :  { %v250_v38 = vpop.xlane.xlu1 %249 }
 0x1de   :  { %v238_v39 = vpop.xlane.xlu0 %237  ;;  %292 = vlog2.f32 %v250_v38 }
 0x1df   :  { %294 = vlog2.f32 %v238_v39 }
 0x1e0   :  { %296 = vrcp.f32 %v250_v38 }
 0x1e8   :  { %v293_v40 = vpop.eup %292 }
 0x1e9   :  { %v295_v41 = vpop.eup %294  ;;  %v254_v42 = vmul.f32 0.6931472, %v293_v40 }
 0x1ea   :  { %v240_v43 = vmul.f32 0.6931472, %v295_v41  ;;  %v297_v44 = vpop.eup %296 }
 0x1eb   :  { %v255_v45 = vsub.f32 %v245_v30, %v254_v42  ;;  %v252_v47 = vmul.f32 %v297_v44, %v289_v34 }
 0x1ec   :  { %v241_v46 = vsub.f32 %v233_v31, %v240_v43 }
 0x1ee   :  { %v256_v48 = vsub.f32 %v255_v45, %v241_v46 }
 0x1f0   :  { %v257_v49 = vmul.f32 %v256_v48, %v252_v47 }
 0x1f2   :  { %v258_v50 = vsel %vm229_vm8, %v257_v49, 0.0 }
 0x1f3   :  { %259 = vadd.xlane.f32.xlu0 %v258_v50 }
 0x280   :  { %v260_v51 = vpop.xlane.xlu0 %259 }
 0x281   :  { %v261_v52 = vrot.slane %v260_v51, 4 }
 0x283   :  { %v262_v53 = vadd.f32 %v261_v52, %v260_v51 }
 0x285   :  { %v263_v54 = vrot.slane %v262_v53, 2 }
 0x287   :  { %v264_v55 = vadd.f32 %v263_v54, %v262_v53 }
 0x289   :  { %v265_v56 = vrot.slane %v264_v55, 1 }
 0x28b   :  { %v266_v57 = vadd.f32 %v265_v56, %v264_v55 }
 0x28d   :  { %284 = vpush %v266_v57 }
 0x2be   :  { %s285_s4 = spop %284 }
 0x2bf   :  { %v268_v58 = vstv %s285_s4 }
 0x2c0   :  { %269 = vst [vmem:[#allocation2] sm:$0xff] %v268_v58 }
 0x2c1   :  { %309 = shalt.err (!%p306_p4)
}
 0x2c2   :  { %s310_s21 = scalar_lea.hbm %s436_s6, 128 }
 0x2c3   :  { %p311_p5 = scmp.ne.s32.totalorder %s436_s6, %s310_s21  ;;  %p314_p6 = scmp.lt.u32.totalorder %s310_s21, %s436_s6 }
 0x2c5   :  { %p316_p7 = pnand %p314_p6, %p311_p5 }
 0x2c7   :  { %319 = shalt.err (!%p316_p7)
}
 0x2c8   :  { %279 = dma.vmem_to_hbm [thread:$0]  %s277_s2, 128, %s436_s6, [#allocation3]  }
 0x2c9   :  { %320 = dma.done.wait [#allocation3], 128  }
 0x2ca   :  { %321 = vsyncadd [#allocation3], 4294967168 }
 0x2cb   :  { %283 = vsyncpa [#allocation3], 1 }

</bundles_post_ra>
